<compile_context>
chip_gen: v6e
topology: v6e:2x2x1
jax: 0.10.0
libtpu: 0.0.40
codegen_flags: <defaults>
</compile_context>

<pallas_src>
import math
import jax
import jax.numpy as jnp
from jax.experimental import pallas as pl
from jax.experimental.pallas import tpu as pltpu


def rnn_kernel(x_ref, w_hx_t_ref, w_hh_t_ref, b_h_ref, w_ph_t_ref, b_p_ref,
               out_ref):
    """Single-invocation kernel, (B, H) orientation, recurrence fully unrolled.

    x_ref:      (B, T)  input sequence, native layout
    w_hx_t_ref: (1, H)  == w_hx.T           (input_dim == 1)
    w_hh_t_ref: (H, H)  == w_hh.T
    b_h_ref:    (B, 1)  quirky bias (added along batch rows; requires B == H)
    w_ph_t_ref: (H, C)  == w_ph.T
    b_p_ref:    (1, C)
    out_ref:    (B, C)  final logits (no post-transpose needed)
    """
    T = x_ref.shape[1]

    x = x_ref[...]                 # (B, T)
    w_hx_t = w_hx_t_ref[...]       # (1, H)
    w_hh_t = w_hh_t_ref[...]       # (H, H)
    b_h = b_h_ref[...]             # (B, 1)

    # Peeled t = 0: prev_h == 0  =>  recurrent matmul vanishes.
    h = jnp.tanh(x[:, 0:1] * w_hx_t + b_h)                     # (B, H)

    # Fully unrolled recurrence; h stays a vreg-resident carry.
    for t in range(1, T):
        wxb = x[:, t:t + 1] * w_hx_t + b_h                     # (B, H) VPU work
        hh = jnp.dot(h, w_hh_t, preferred_element_type=jnp.float32)  # MXU
        h = jnp.tanh(wxb + hh)

    out_ref[...] = (jnp.dot(h, w_ph_t_ref[...],
                            preferred_element_type=jnp.float32)
                    + b_p_ref[...])                            # (B, C) + (1, C)


def vanilla_rnn_forward(x, w_hx, w_hh, b_h, w_ph, b_p):
    """x: (B, T) float32. Returns (B, C) float32."""
    B, T = x.shape
    H = w_hh.shape[0]
    C = w_ph.shape[0]
    # PyTorch's `+ b_h` broadcast only works when batch == hidden (see header).
    assert B == H, "original module's b_h broadcast requires batch_size == num_hidden"

    # Constant-side (weight) reshapes/transposes only -- no data-path transposes.
    w_hx_t = w_hx.reshape(1, H)      # (H, 1) -> (1, H)
    w_hh_t = jnp.transpose(w_hh)     # (H, H)
    w_ph_t = jnp.transpose(w_ph)     # (H, C)
    b_h_col = b_h.reshape(B, 1)      # quirky bias: varies along the batch axis
    b_p_row = b_p.reshape(1, C)

    vmem = lambda: pl.BlockSpec(memory_space=pltpu.MemorySpace.VMEM)

    out = pl.pallas_call(
        rnn_kernel,
        out_shape=jax.ShapeDtypeStruct((B, C), jnp.float32),
        in_specs=[vmem(), vmem(), vmem(), vmem(), vmem(), vmem()],
        out_specs=vmem(),
    )(x, w_hx_t, w_hh_t, b_h_col, w_ph_t, b_p_row)

    return out                       # already (B, C); matches p.permute(1, 0)


def reference_forward(x, w_hx, w_hh, b_h, w_ph, b_p):
    """Pure-JAX replica of the PyTorch forward (incl. the b_h broadcast quirk)."""
    B, T = x.shape
    H = w_hh.shape[0]
    prev_h = jnp.zeros((H, B), jnp.float32)
    for t in range(T):
        x_t = x[:, t][None, :]                               # (1, B)
        prev_h = jnp.tanh(w_hx @ x_t + w_hh @ prev_h + b_h)  # b_h bcast over cols
    p = w_ph @ prev_h + b_p[:, None]
    return p.T


if __name__ == "__main__":
    # Small shapes consistent with the module: input_dim = 1, batch == hidden.
    seq_length = 8
    input_dim = 1
    num_hidden = 32
    num_classes = 10
    batch_size = 32          # must equal num_hidden (b_h broadcast quirk)

    stdv = 1.0 / math.sqrt(num_hidden)
    key = jax.random.PRNGKey(0)
    kx, k1, k2, k3, k4, k5 = jax.random.split(key, 6)

    x = jax.random.normal(kx, (batch_size, seq_length), jnp.float32)
    w_hx = stdv * jax.random.normal(k1, (num_hidden, input_dim), jnp.float32)
    w_hh = stdv * jax.random.normal(k2, (num_hidden, num_hidden), jnp.float32)
    b_h = stdv * jax.random.normal(k3, (num_hidden,), jnp.float32)
    w_ph = stdv * jax.random.normal(k4, (num_classes, num_hidden), jnp.float32)
    b_p = stdv * jax.random.normal(k5, (num_classes,), jnp.float32)

    fwd = jax.jit(vanilla_rnn_forward)
    out = fwd(x, w_hx, w_hh, b_h, w_ph, b_p)
    out = jax.block_until_ready(out)

    ref = reference_forward(x, w_hx, w_hh, b_h, w_ph, b_p)
    assert out.shape == (batch_size, num_classes)
    assert jnp.allclose(out, ref, atol=1e-5, rtol=1e-5), "mismatch vs reference"

    print("KERNEL_OK")
</pallas_src>

<mosaic_0001>
module attributes {stable_mosaic.version = 11 : i64} {
  func.func @rnn_kernel(%arg0: memref<32x8xf32, #tpu.memory_space<vmem>>, %arg1: memref<1x32xf32, #tpu.memory_space<vmem>>, %arg2: memref<32x32xf32, #tpu.memory_space<vmem>>, %arg3: memref<32x1xf32, #tpu.memory_space<vmem>>, %arg4: memref<32x10xf32, #tpu.memory_space<vmem>>, %arg5: memref<1x10xf32, #tpu.memory_space<vmem>>, %arg6: memref<32x10xf32, #tpu.memory_space<vmem>>) attributes {dimension_semantics = [], scalar_prefetch = 0 : i64, scratch_operands = 0 : i64, tpu.core_type = #tpu.core_type<tc>} {
    %c0 = arith.constant 0 : index
    %c0_0 = arith.constant 0 : index
    %0 = vector.load %arg0[%c0, %c0_0] : memref<32x8xf32, #tpu.memory_space<vmem>>, vector<32x8xf32>
    %c0_1 = arith.constant 0 : index
    %c0_2 = arith.constant 0 : index
    %1 = vector.load %arg1[%c0_1, %c0_2] : memref<1x32xf32, #tpu.memory_space<vmem>>, vector<1x32xf32>
    %c0_3 = arith.constant 0 : index
    %c0_4 = arith.constant 0 : index
    %2 = vector.load %arg2[%c0_3, %c0_4] : memref<32x32xf32, #tpu.memory_space<vmem>>, vector<32x32xf32>
    %c0_5 = arith.constant 0 : index
    %c0_6 = arith.constant 0 : index
    %3 = vector.load %arg3[%c0_5, %c0_6] : memref<32x1xf32, #tpu.memory_space<vmem>>, vector<32x1xf32>
    %4 = vector.extract_strided_slice %0 {offsets = [0, 0], sizes = [32, 1], strides = [1, 1]} : vector<32x8xf32> to vector<32x1xf32>
    %5 = vector.broadcast %4 : vector<32x1xf32> to vector<32x32xf32>
    %6 = vector.broadcast %1 : vector<1x32xf32> to vector<32x32xf32>
    %7 = arith.mulf %5, %6 : vector<32x32xf32>
    %8 = vector.broadcast %3 : vector<32x1xf32> to vector<32x32xf32>
    %9 = arith.addf %7, %8 : vector<32x32xf32>
    %10 = math.tanh %9 : vector<32x32xf32>
    %11 = vector.extract_strided_slice %0 {offsets = [0, 1], sizes = [32, 1], strides = [1, 1]} : vector<32x8xf32> to vector<32x1xf32>
    %12 = vector.broadcast %11 : vector<32x1xf32> to vector<32x32xf32>
    %13 = vector.broadcast %1 : vector<1x32xf32> to vector<32x32xf32>
    %14 = arith.mulf %12, %13 : vector<32x32xf32>
    %15 = vector.broadcast %3 : vector<32x1xf32> to vector<32x32xf32>
    %16 = arith.addf %14, %15 : vector<32x32xf32>
    %cst = arith.constant dense<0.000000e+00> : vector<32x32xf32>
    %17 = tpu.matmul %10, %2, %cst {dimension_numbers = #tpu.dot_dimension_numbers<[1], [0], [0], [1], [0, 0, 1, 1], [], []>} : vector<32x32xf32>, vector<32x32xf32>, vector<32x32xf32> -> vector<32x32xf32>
    %18 = arith.addf %16, %17 : vector<32x32xf32>
    %19 = math.tanh %18 : vector<32x32xf32>
    %20 = vector.extract_strided_slice %0 {offsets = [0, 2], sizes = [32, 1], strides = [1, 1]} : vector<32x8xf32> to vector<32x1xf32>
    %21 = vector.broadcast %20 : vector<32x1xf32> to vector<32x32xf32>
    %22 = vector.broadcast %1 : vector<1x32xf32> to vector<32x32xf32>
    %23 = arith.mulf %21, %22 : vector<32x32xf32>
    %24 = vector.broadcast %3 : vector<32x1xf32> to vector<32x32xf32>
    %25 = arith.addf %23, %24 : vector<32x32xf32>
    %cst_7 = arith.constant dense<0.000000e+00> : vector<32x32xf32>
    %26 = tpu.matmul %19, %2, %cst_7 {dimension_numbers = #tpu.dot_dimension_numbers<[1], [0], [0], [1], [0, 0, 1, 1], [], []>} : vector<32x32xf32>, vector<32x32xf32>, vector<32x32xf32> -> vector<32x32xf32>
    %27 = arith.addf %25, %26 : vector<32x32xf32>
    %28 = math.tanh %27 : vector<32x32xf32>
    %29 = vector.extract_strided_slice %0 {offsets = [0, 3], sizes = [32, 1], strides = [1, 1]} : vector<32x8xf32> to vector<32x1xf32>
    %30 = vector.broadcast %29 : vector<32x1xf32> to vector<32x32xf32>
    %31 = vector.broadcast %1 : vector<1x32xf32> to vector<32x32xf32>
    %32 = arith.mulf %30, %31 : vector<32x32xf32>
    %33 = vector.broadcast %3 : vector<32x1xf32> to vector<32x32xf32>
    %34 = arith.addf %32, %33 : vector<32x32xf32>
    %cst_8 = arith.constant dense<0.000000e+00> : vector<32x32xf32>
    %35 = tpu.matmul %28, %2, %cst_8 {dimension_numbers = #tpu.dot_dimension_numbers<[1], [0], [0], [1], [0, 0, 1, 1], [], []>} : vector<32x32xf32>, vector<32x32xf32>, vector<32x32xf32> -> vector<32x32xf32>
    %36 = arith.addf %34, %35 : vector<32x32xf32>
    %37 = math.tanh %36 : vector<32x32xf32>
    %38 = vector.extract_strided_slice %0 {offsets = [0, 4], sizes = [32, 1], strides = [1, 1]} : vector<32x8xf32> to vector<32x1xf32>
    %39 = vector.broadcast %38 : vector<32x1xf32> to vector<32x32xf32>
    %40 = vector.broadcast %1 : vector<1x32xf32> to vector<32x32xf32>
    %41 = arith.mulf %39, %40 : vector<32x32xf32>
    %42 = vector.broadcast %3 : vector<32x1xf32> to vector<32x32xf32>
    %43 = arith.addf %41, %42 : vector<32x32xf32>
    %cst_9 = arith.constant dense<0.000000e+00> : vector<32x32xf32>
    %44 = tpu.matmul %37, %2, %cst_9 {dimension_numbers = #tpu.dot_dimension_numbers<[1], [0], [0], [1], [0, 0, 1, 1], [], []>} : vector<32x32xf32>, vector<32x32xf32>, vector<32x32xf32> -> vector<32x32xf32>
    %45 = arith.addf %43, %44 : vector<32x32xf32>
    %46 = math.tanh %45 : vector<32x32xf32>
    %47 = vector.extract_strided_slice %0 {offsets = [0, 5], sizes = [32, 1], strides = [1, 1]} : vector<32x8xf32> to vector<32x1xf32>
    %48 = vector.broadcast %47 : vector<32x1xf32> to vector<32x32xf32>
    %49 = vector.broadcast %1 : vector<1x32xf32> to vector<32x32xf32>
    %50 = arith.mulf %48, %49 : vector<32x32xf32>
    %51 = vector.broadcast %3 : vector<32x1xf32> to vector<32x32xf32>
    %52 = arith.addf %50, %51 : vector<32x32xf32>
    %cst_10 = arith.constant dense<0.000000e+00> : vector<32x32xf32>
    %53 = tpu.matmul %46, %2, %cst_10 {dimension_numbers = #tpu.dot_dimension_numbers<[1], [0], [0], [1], [0, 0, 1, 1], [], []>} : vector<32x32xf32>, vector<32x32xf32>, vector<32x32xf32> -> vector<32x32xf32>
    %54 = arith.addf %52, %53 : vector<32x32xf32>
    %55 = math.tanh %54 : vector<32x32xf32>
    %56 = vector.extract_strided_slice %0 {offsets = [0, 6], sizes = [32, 1], strides = [1, 1]} : vector<32x8xf32> to vector<32x1xf32>
    %57 = vector.broadcast %56 : vector<32x1xf32> to vector<32x32xf32>
    %58 = vector.broadcast %1 : vector<1x32xf32> to vector<32x32xf32>
    %59 = arith.mulf %57, %58 : vector<32x32xf32>
    %60 = vector.broadcast %3 : vector<32x1xf32> to vector<32x32xf32>
    %61 = arith.addf %59, %60 : vector<32x32xf32>
    %cst_11 = arith.constant dense<0.000000e+00> : vector<32x32xf32>
    %62 = tpu.matmul %55, %2, %cst_11 {dimension_numbers = #tpu.dot_dimension_numbers<[1], [0], [0], [1], [0, 0, 1, 1], [], []>} : vector<32x32xf32>, vector<32x32xf32>, vector<32x32xf32> -> vector<32x32xf32>
    %63 = arith.addf %61, %62 : vector<32x32xf32>
    %64 = math.tanh %63 : vector<32x32xf32>
    %65 = vector.extract_strided_slice %0 {offsets = [0, 7], sizes = [32, 1], strides = [1, 1]} : vector<32x8xf32> to vector<32x1xf32>
    %66 = vector.broadcast %65 : vector<32x1xf32> to vector<32x32xf32>
    %67 = vector.broadcast %1 : vector<1x32xf32> to vector<32x32xf32>
    %68 = arith.mulf %66, %67 : vector<32x32xf32>
    %69 = vector.broadcast %3 : vector<32x1xf32> to vector<32x32xf32>
    %70 = arith.addf %68, %69 : vector<32x32xf32>
    %cst_12 = arith.constant dense<0.000000e+00> : vector<32x32xf32>
    %71 = tpu.matmul %64, %2, %cst_12 {dimension_numbers = #tpu.dot_dimension_numbers<[1], [0], [0], [1], [0, 0, 1, 1], [], []>} : vector<32x32xf32>, vector<32x32xf32>, vector<32x32xf32> -> vector<32x32xf32>
    %72 = arith.addf %70, %71 : vector<32x32xf32>
    %73 = math.tanh %72 : vector<32x32xf32>
    %c0_13 = arith.constant 0 : index
    %c0_14 = arith.constant 0 : index
    %74 = vector.load %arg4[%c0_13, %c0_14] : memref<32x10xf32, #tpu.memory_space<vmem>>, vector<32x10xf32>
    %cst_15 = arith.constant dense<0.000000e+00> : vector<32x10xf32>
    %75 = tpu.matmul %73, %74, %cst_15 {dimension_numbers = #tpu.dot_dimension_numbers<[1], [0], [0], [1], [0, 0, 1, 1], [], []>} : vector<32x32xf32>, vector<32x10xf32>, vector<32x10xf32> -> vector<32x10xf32>
    %c0_16 = arith.constant 0 : index
    %c0_17 = arith.constant 0 : index
    %76 = vector.load %arg5[%c0_16, %c0_17] : memref<1x10xf32, #tpu.memory_space<vmem>>, vector<1x10xf32>
    %77 = vector.broadcast %76 : vector<1x10xf32> to vector<32x10xf32>
    %78 = arith.addf %75, %77 : vector<32x10xf32>
    %c0_18 = arith.constant 0 : index
    %c0_19 = arith.constant 0 : index
    %79 = vector.load %arg6[%c0_18, %c0_19] : memref<32x10xf32, #tpu.memory_space<vmem>>, vector<32x10xf32>
    tpu.vector_store %arg6[%c0_18, %c0_19], %78 {strides = array<i32>} : memref<32x10xf32, #tpu.memory_space<vmem>>, vector<32x10xf32>,
    return
  }
}

</mosaic_0001>

<bundles_post_ra>
// kernel: vanilla_rnn_forward.1
= control target key start
LH: loop header
LB: loop body
LE: loop exit
PB: predicated region body
PF: predicated region fallthrough
CT: control target
= control target key end

     0   :  { %v1413_v0 = vmov 0   ;;  %v1414_v12 = vmov 1   ;;  %v1415_v14 = vmov 2   ;;  %v1416_v15 = vmov 3   ;;  %s1732_s3 = inlined_call_operand.vmem [shape: f32[32,1], index: 3, kind: input, shape index: {}]   ;;  %s1733_s0 = inlined_call_operand.vmem [shape: f32[32,8], index: 0, kind: input, shape index: {}]   ;;  %s1734_s2 = inlined_call_operand.vmem [shape: f32[32,32], index: 2, kind: input, shape index: {}]   ;;  %s1735_s1 = inlined_call_operand.vmem [shape: f32[1,32], index: 1, kind: input, shape index: {}]   ;;  %s1736_s4 = inlined_call_operand.vmem [shape: f32[32,10], index: 4, kind: input, shape index: {}]   ;;  %s1737_s5 = inlined_call_operand.vmem [shape: f32[1,10], index: 5, kind: input, shape index: {}]   ;;  %s1738_s6 = inlined_call_operand.vmem [shape: f32[32,10], index: 6, kind: output, shape index: {}]  }
   0x1   :  { %1334 = vset.pattern.permute.xlu1 %v1413_v0  ;;  %1333 = vset.pattern.permute.xlu0 %v1413_v0  ;;  %v32_v1 = vld [vmem:[%s1732_s3] sm:$0xff]  ;;  %v33_v3 = vld [vmem:[%s1732_s3 + $0x8] sm:$0xff]  ;;  %v1477_v5 = vld [vmem:[%s1733_s0 + $0x18] sm:$0xff]  ;;  %v1417_v16 = vmov 4   ;;  %v1418_v17 = vmov 5   ;;  %v1419_v18 = vmov 6  }
   0x2   :  { %v1462_v2 = vld [vmem:[%s1733_s0] sm:$0xff]  ;;  %68 = vperm.xlu1 %1334, %v32_v1   ;;  %v1471_v4 = vld [vmem:[%s1733_s0 + $0x8] sm:$0xff]  ;;  %v1482_v6 = vld [vmem:[%s1733_s0 + $0x10] sm:$0xff]  ;;  %v1420_v19 = vmov 7   ;;  %vm118_vm0 = vcmask 261120   ;;  %vm1106_vm1 = vcmask 80896  }
   0x3   :  { %38 = vperm.xlu0 %1333, %v1462_v2   ;;  %v35_v7 = vld [vmem:[%s1732_s3 + $0x18] sm:$0xff]  ;;  %v34_v8 = vld [vmem:[%s1732_s3 + $0x10] sm:$0xff]  ;;  %v1512_v11 = vld [vmem:[%s1734_s2 + $0x8] sm:$0xff] }
   0x4   :  { %v1495_v9 = vld [vmem:[%s1734_s2 + $0x18] sm:$0xff]  ;;  %v1501_v10 = vld [vmem:[%s1734_s2 + $0x10] sm:$0xff]  ;;  %v1520_v13 = vld [vmem:[%s1734_s2] sm:$0xff] }
   0x5   :  { %1213 = vmatprep.subr.mxu0 %v1495_v9  ;;  %1227 = vmatprep.subr.mxu1 %v1495_v9  ;;  %v1561_v20 = vld [vmem:[%s1735_s1] ss:$0 sm:$0xff] }
   0x6   :  { %73 = vperm.xlu1 %1334, %v33_v3   ;;  %1214 = vmatpush3.msra.mxu0 %v1495_v9 }
   0x7   :  { %43 = vperm.xlu0 %1333, %v1471_v4   ;;  %1228 = vmatpush3.msra.mxu1 %v1495_v9 }
   0x8   :  { %1215 = vmatprep.subr.mxu0 %v1501_v10  ;;  %1229 = vmatprep.subr.mxu1 %v1501_v10 }
   0x9   :  { %1216 = vmatpush3.msra.mxu0 %v1501_v10  ;;  %1230 = vmatpush3.msra.mxu1 %v1501_v10 }
   0xa   :  { %53 = vperm.xlu1 %1334, %v1477_v5   ;;  %1217 = vmatprep.subr.mxu0 %v1512_v11 }
   0xb   :  { %48 = vperm.xlu0 %1333, %v1482_v6   ;;  %1231 = vmatprep.subr.mxu1 %v1512_v11 }
   0xc   :  { %1218 = vmatpush3.msra.mxu0 %v1512_v11  ;;  %1232 = vmatpush3.msra.mxu1 %v1512_v11 }
   0xd   :  { %1219 = vmatprep.subr.mxu0 %v1520_v13  ;;  %1233 = vmatprep.subr.mxu1 %v1520_v13 }
   0xe   :  { %83 = vperm.xlu1 %1334, %v35_v7   ;;  %1220 = vmatpush3.msra.mxu0 %v1520_v13 }
   0xf   :  { %78 = vperm.xlu0 %1333, %v34_v8   ;;  %1234 = vmatpush3.msra.mxu1 %v1520_v13 }
  0x10   :  { %1241 = vmatprep.subr.mxu0 %v1495_v9  ;;  %1255 = vmatprep.subr.mxu1 %v1495_v9 }
  0x12   :  { %1336 = vset.pattern.permute.xlu1 %v1414_v12 }
  0x13   :  { %1335 = vset.pattern.permute.xlu0 %v1414_v12  ;;  %99 = vperm.xlu1 %1336, %v1471_v4  }
  0x14   :  { %95 = vperm.xlu0 %1335, %v1462_v2  }
  0x17   :  { %103 = vperm.xlu1 %1336, %v1482_v6  }
  0x18   :  { %107 = vperm.xlu0 %1335, %v1477_v5  }
  0x1b   :  { %1337 = vset.pattern.permute.xlu1 %v1415_v14 }
  0x1c   :  { %1338 = vset.pattern.permute.xlu0 %v1415_v14  ;;  %225 = vperm.xlu1 %1337, %v1462_v2  }
  0x1d   :  { %229 = vperm.xlu0 %1338, %v1471_v4  }
  0x20   :  { %233 = vperm.xlu1 %1337, %v1482_v6  }
  0x21   :  { %1339 = vset.pattern.permute.xlu0 %v1416_v15 }
  0x22   :  { %354 = vperm.xlu0 %1339, %v1462_v2  }
  0x24   :  { %237 = vperm.xlu1 %1337, %v1477_v5  }
  0x26   :  { %366 = vperm.xlu0 %1339, %v1477_v5  }
  0x28   :  { %1340 = vset.pattern.permute.xlu1 %v1416_v15 }
  0x29   :  { %358 = vperm.xlu1 %1340, %v1471_v4  }
  0x2a   :  { %1342 = vset.pattern.permute.xlu0 %v1417_v16 }
  0x2b   :  { %487 = vperm.xlu0 %1342, %v1471_v4  }
  0x2d   :  { %362 = vperm.xlu1 %1340, %v1482_v6  }
  0x2f   :  { %1343 = vset.pattern.permute.xlu0 %v1418_v17 }
  0x30   :  { %612 = vperm.xlu0 %1343, %v1462_v2  }
  0x31   :  { %1341 = vset.pattern.permute.xlu1 %v1417_v16 }
  0x32   :  { %483 = vperm.xlu1 %1341, %v1462_v2  }
  0x34   :  { %624 = vperm.xlu0 %1343, %v1477_v5  }
  0x36   :  { %491 = vperm.xlu1 %1341, %v1482_v6  }
  0x38   :  { %1346 = vset.pattern.permute.xlu0 %v1419_v18 }
  0x39   :  { %745 = vperm.xlu0 %1346, %v1471_v4  }
  0x3a   :  { %495 = vperm.xlu1 %1341, %v1477_v5  }
  0x3d   :  { %1347 = vset.pattern.permute.xlu0 %v1420_v19 }
  0x3e   :  { %870 = vperm.xlu0 %1347, %v1462_v2   ;;  %1344 = vset.pattern.permute.xlu1 %v1418_v17 }
  0x3f   :  { %616 = vperm.xlu1 %1344, %v1471_v4  }
  0x42   :  { %882 = vperm.xlu0 %1347, %v1477_v5  }
  0x43   :  { %620 = vperm.xlu1 %1344, %v1482_v6  }
  0x47   :  { %1345 = vset.pattern.permute.xlu1 %v1419_v18 }
  0x48   :  { %741 = vperm.xlu1 %1345, %v1462_v2  }
  0x4c   :  { %749 = vperm.xlu1 %1345, %v1482_v6  }
  0x50   :  { %753 = vperm.xlu1 %1345, %v1477_v5  }
  0x54   :  { %1348 = vset.pattern.permute.xlu1 %v1420_v19 }
  0x55   :  { %874 = vperm.xlu1 %1348, %v1471_v4  }
  0x59   :  { %878 = vperm.xlu1 %1348, %v1482_v6  }
  0x7d   :  { %v1563_v21 = vpop.permute.xlu1 %68 }
  0x7e   :  { %v39_v22 = vpop.permute.xlu0 %38 }
  0x7f   :  { %v62_v23 = vmul.f32 %v1561_v20, %v39_v22 }
  0x81   :  { %v86_v24 = vadd.f32 %v1563_v21, %v62_v23  ;;  %v1567_v25 = vpop.permute.xlu1 %73 }
  0x82   :  { %v44_v26 = vpop.permute.xlu0 %43 }
  0x83   :  { %1349 = vtanh.f32 %v86_v24  ;;  %v63_v27 = vmul.f32 %v1561_v20, %v44_v26 }
  0x85   :  { %v87_v28 = vadd.f32 %v1567_v25, %v63_v27  ;;  %v54_v29 = vpop.permute.xlu1 %53 }
  0x86   :  { %v49_v30 = vpop.permute.xlu0 %48  ;;  %v65_v31 = vmul.f32 %v1561_v20, %v54_v29 }
  0x87   :  { %1351 = vtanh.f32 %v87_v28  ;;  %v64_v32 = vmul.f32 %v1561_v20, %v49_v30 }
  0x89   :  { %v1573_v33 = vpop.permute.xlu1 %83 }
  0x8a   :  { %v1575_v34 = vpop.permute.xlu0 %78  ;;  %v89_v35 = vadd.f32 %v1573_v33, %v65_v31 }
  0x8b   :  { %v88_v36 = vadd.f32 %v1575_v34, %v64_v32 }
  0x8c   :  { %1353 = vtanh.f32 %v89_v35 }
  0x8d   :  { %1355 = vtanh.f32 %v88_v36 }
  0x8e   :  { %v100_v41 = vpop.permute.xlu1 %99 }
  0x8f   :  { %v96_v42 = vpop.permute.xlu0 %95  ;;  %v111_v43 = vmul.f32 %v1561_v20, %v100_v41 }
  0x90   :  { %v1350_v37 = vpop.eup %1349  ;;  %v110_v44 = vmul.f32 %v1561_v20, %v96_v42 }
  0x91   :  { %1221 = vmatprep.mubr.msk.f32.mxu0 %vm118_vm0, %v1350_v37  ;;  %v115_v45 = vadd.f32 %v111_v43, %v1567_v25 }
  0x92   :  { %v114_v48 = vadd.f32 %v110_v44, %v1563_v21  ;;  %v104_v49 = vpop.permute.xlu1 %103 }
  0x93   :  { %v108_v47 = vpop.permute.xlu0 %107  ;;  %v112_v54 = vmul.f32 %v1561_v20, %v104_v49 }
  0x94   :  { %v1352_v38 = vpop.eup %1351  ;;  %v113_v53 = vmul.f32 %v1561_v20, %v108_v47 }
  0x95   :  { %1222 = vmatmul.mubr.msk.f32.vlgmr.msra.gmra.mxu0 %vm118_vm0, %v1352_v38  ;;  %v116_v57 = vadd.f32 %v112_v54, %v1575_v34 }
  0x96   :  { %1242 = vmatpush3.msra.mxu0 %v1495_v9  ;;  %v117_v55 = vadd.f32 %v113_v53, %v1573_v33 }
  0x97   :  { %1243 = vmatprep.subr.mxu0 %v1501_v10  ;;  %v226_v1 = vpop.permute.xlu1 %225 }
  0x98   :  { %1244 = vmatpush3.msra.mxu0 %v1501_v10  ;;  %v230_v2 = vpop.permute.xlu0 %229  ;;  %v240_v5 = vmul.f32 %v1561_v20, %v226_v1 }
  0x99   :  { %1245 = vmatprep.subr.mxu0 %v1512_v11  ;;  %v1354_v39 = vpop.eup %1353  ;;  %v241_v4 = vmul.f32 %v1561_v20, %v230_v2 }
  0x9a   :  { %1246 = vmatpush3.msra.mxu0 %v1512_v11  ;;  %v1356_v40 = vpop.eup %1355  ;;  %v244_v12 = vadd.f32 %v240_v5, %v1563_v21 }
  0x9b   :  { %1247 = vmatprep.subr.mxu0 %v1520_v13  ;;  %1224 = vmatprep.mubr.msk.f32.mxu0 %vm118_vm0, %v1356_v40  ;;  %v234_v3 = vpop.permute.xlu1 %233  ;;  %v245_v6 = vadd.f32 %v241_v4, %v1567_v25 }
  0x9c   :  { %1248 = vmatpush3.msra.mxu0 %v1520_v13  ;;  %v242_v18 = vmul.f32 %v1561_v20, %v234_v3 }
  0x9d   :  { %1225 = vmatmul.mubr.msk.f32.gmra.mxu0 %vm118_vm0, %v1354_v39  ;;  %1269 = vmatprep.subr.mxu0 %v1495_v9  ;;  %v355_v35 = vpop.permute.xlu0 %354 }
  0x9e   :  { %v246_v23 = vadd.f32 %v242_v18, %v1575_v34  ;;  %v369_v37 = vmul.f32 %v1561_v20, %v355_v35 }
  0x9f   :  { %v238_v8 = vpop.permute.xlu1 %237 }
  0xa0   :  { %v243_v17 = vmul.f32 %v1561_v20, %v238_v8  ;;  %v373_v41 = vadd.f32 %v369_v37, %v1563_v21 }
  0xa1   :  { %v367_v40 = vpop.permute.xlu0 %366 }
  0xa2   :  { %v247_v19 = vadd.f32 %v243_v17, %v1573_v33 }
  0xa4   :  { %v359_v32 = vpop.permute.xlu1 %358 }
  0xa5   :  { %v370_v36 = vmul.f32 %v1561_v20, %v359_v32 }
  0xa7   :  { %v374_v38 = vadd.f32 %v370_v36, %v1567_v25 }
  0xa8   :  { %v363_v42 = vpop.permute.xlu1 %362 }
  0xa9   :  { %v371_v47 = vmul.f32 %v1561_v20, %v363_v42 }
 0x155   :  { %v1223_v46 = vpop.f32.mrf.mxu0 }
 0x156   :  { %v217_v50 = vadd.f32 %v1223_v46, %v115_v45  ;;  %v372_v46 = vmul.f32 %v1561_v20, %v367_v40 }
 0x157   :  { %v197_v51 = vpop.f32.mrf.mxu0 }
 0x158   :  { %v216_v52 = vadd.f32 %v197_v51, %v114_v48  ;;  %v376_v48 = vadd.f32 %v372_v46, %v1573_v33 }
 0x15a   :  { %1357 = vtanh.f32 %v216_v52 }
 0x15b   :  { %1359 = vtanh.f32 %v217_v50  ;;  %v375_v50 = vadd.f32 %v371_v47, %v1575_v34 }
 0x15d   :  { %v1226_v56 = vpop.f32.mrf.mxu0 }
 0x15e   :  { %v219_v58 = vadd.f32 %v1226_v56, %v117_v55 }
 0x15f   :  { %v207_v59 = vpop.f32.mrf.mxu0 }
 0x160   :  { %v218_v60 = vadd.f32 %v207_v59, %v116_v57  ;;  %v488_v59 = vpop.permute.xlu0 %487 }
 0x162   :  { %1361 = vtanh.f32 %v218_v60 }
 0x163   :  { %1363 = vtanh.f32 %v219_v58  ;;  %v484_v58 = vpop.permute.xlu1 %483 }
 0x167   :  { %v1358_v61 = vpop.eup %1357  ;;  %v492_v60 = vpop.permute.xlu1 %491 }
 0x168   :  { %v1360_v62 = vpop.eup %1359  ;;  %1235 = vmatprep.mubr.msk.f32.mxu1 %vm118_vm0, %v1358_v61  ;;  %v499_v61 = vmul.f32 %v1561_v20, %v488_v59 }
 0x169   :  { %1236 = vmatmul.mubr.msk.f32.vlgmr.msra.gmra.mxu1 %vm118_vm0, %v1360_v62  ;;  %v498_v62 = vmul.f32 %v1561_v20, %v484_v58 }
 0x16a   :  { %1256 = vmatpush3.msra.mxu1 %v1495_v9 }
 0x16b   :  { %1257 = vmatprep.subr.mxu1 %v1501_v10  ;;  %v496_v1 = vpop.permute.xlu1 %495  ;;  %v502_v2 = vadd.f32 %v498_v62, %v1563_v21 }
 0x16c   :  { %1258 = vmatpush3.msra.mxu1 %v1501_v10 }
 0x16d   :  { %1259 = vmatprep.subr.mxu1 %v1512_v11 }
 0x16e   :  { %1260 = vmatpush3.msra.mxu1 %v1512_v11 }
 0x16f   :  { %v1362_v63 = vpop.eup %1361  ;;  %1261 = vmatprep.subr.mxu1 %v1520_v13 }
 0x170   :  { %v1364_v0 = vpop.eup %1363  ;;  %1238 = vmatprep.mubr.msk.f32.mxu1 %vm118_vm0, %v1362_v63  ;;  %1262 = vmatpush3.msra.mxu1 %v1520_v13  ;;  %v503_v63 = vadd.f32 %v499_v61, %v1567_v25 }
 0x171   :  { %1239 = vmatmul.mubr.msk.f32.gmra.mxu1 %vm118_vm0, %v1364_v0  ;;  %1283 = vmatprep.subr.mxu1 %v1495_v9 }
 0x229   :  { %v1237_v7 = vpop.f32.mrf.mxu1 }
 0x22a   :  { %v346_v14 = vadd.f32 %v1237_v7, %v245_v6  ;;  %v501_v6 = vmul.f32 %v1561_v20, %v496_v1  ;;  %v500_v7 = vmul.f32 %v1561_v20, %v492_v60 }
 0x22b   :  { %v326_v15 = vpop.f32.mrf.mxu1 }
 0x22c   :  { %v345_v16 = vadd.f32 %v326_v15, %v244_v12  ;;  %v505_v8 = vadd.f32 %v501_v6, %v1573_v33 }
 0x22e   :  { %1365 = vtanh.f32 %v345_v16 }
 0x22f   :  { %1367 = vtanh.f32 %v346_v14  ;;  %v504_v14 = vadd.f32 %v500_v7, %v1575_v34  ;;  %v1001_v7 = vld [vmem:[%s1736_s4 + $0x18] sm:$0xff] }
 0x231   :  { %v1240_v22 = vpop.f32.mrf.mxu1 }
 0x232   :  { %v348_v24 = vadd.f32 %v1240_v22, %v247_v19 }
 0x233   :  { %v336_v26 = vpop.f32.mrf.mxu1 }
 0x234   :  { %v347_v27 = vadd.f32 %v336_v26, %v246_v23 }
 0x236   :  { %1369 = vtanh.f32 %v347_v27 }
 0x237   :  { %1371 = vtanh.f32 %v348_v24  ;;  %v617_v24 = vpop.permute.xlu1 %616 }
 0x238   :  { %v628_v26 = vmul.f32 %v1561_v20, %v617_v24 }
 0x23a   :  { %v632_v27 = vadd.f32 %v628_v26, %v1567_v25 }
 0x23b   :  { %v1366_v28 = vpop.eup %1365 }
 0x23c   :  { %v1368_v29 = vpop.eup %1367  ;;  %1249 = vmatprep.mubr.msk.f32.mxu0 %vm118_vm0, %v1366_v28 }
 0x23d   :  { %1250 = vmatmul.mubr.msk.f32.vlgmr.msra.gmra.mxu0 %vm118_vm0, %v1368_v29 }
 0x23e   :  { %1270 = vmatpush3.msra.mxu0 %v1495_v9 }
 0x23f   :  { %1271 = vmatprep.subr.mxu0 %v1501_v10 }
 0x240   :  { %1272 = vmatpush3.msra.mxu0 %v1501_v10 }
 0x241   :  { %1273 = vmatprep.subr.mxu0 %v1512_v11 }
 0x242   :  { %1274 = vmatpush3.msra.mxu0 %v1512_v11 }
 0x243   :  { %v1370_v30 = vpop.eup %1369  ;;  %1275 = vmatprep.subr.mxu0 %v1520_v13 }
 0x244   :  { %v1372_v31 = vpop.eup %1371  ;;  %1252 = vmatprep.mubr.msk.f32.mxu0 %vm118_vm0, %v1370_v30  ;;  %1276 = vmatpush3.msra.mxu0 %v1520_v13  ;;  %v621_v30 = vpop.permute.xlu1 %620 }
 0x245   :  { %1253 = vmatmul.mubr.msk.f32.gmra.mxu0 %vm118_vm0, %v1372_v31  ;;  %1297 = vmatprep.subr.mxu0 %v1495_v9  ;;  %v629_v36 = vmul.f32 %v1561_v20, %v621_v30 }
 0x248   :  { %v742_v47 = vpop.permute.xlu1 %741 }
 0x2fd   :  { %v1251_v39 = vpop.f32.mrf.mxu0 }
 0x2fe   :  { %v475_v43 = vadd.f32 %v1251_v39, %v374_v38  ;;  %v633_v39 = vadd.f32 %v629_v36, %v1575_v34 }
 0x2ff   :  { %v455_v44 = vpop.f32.mrf.mxu0 }
 0x300   :  { %v474_v45 = vadd.f32 %v455_v44, %v373_v41 }
 0x302   :  { %1373 = vtanh.f32 %v474_v45 }
 0x303   :  { %1375 = vtanh.f32 %v475_v43 }
 0x305   :  { %v1254_v49 = vpop.f32.mrf.mxu0 }
 0x306   :  { %v477_v51 = vadd.f32 %v1254_v49, %v376_v48  ;;  %v750_v49 = vpop.permute.xlu1 %749 }
 0x307   :  { %v465_v52 = vpop.f32.mrf.mxu0  ;;  %v758_v60 = vmul.f32 %v1561_v20, %v750_v49 }
 0x308   :  { %v476_v53 = vadd.f32 %v465_v52, %v375_v50 }
 0x30a   :  { %1377 = vtanh.f32 %v476_v53 }
 0x30b   :  { %1379 = vtanh.f32 %v477_v51  ;;  %v756_v51 = vmul.f32 %v1561_v20, %v742_v47 }
 0x30f   :  { %v1374_v54 = vpop.eup %1373 }
 0x310   :  { %v1376_v55 = vpop.eup %1375  ;;  %1263 = vmatprep.mubr.msk.f32.mxu1 %vm118_vm0, %v1374_v54  ;;  %v754_v54 = vpop.permute.xlu1 %753 }
 0x311   :  { %1264 = vmatmul.mubr.msk.f32.vlgmr.msra.gmra.mxu1 %vm118_vm0, %v1376_v55  ;;  %v760_v55 = vadd.f32 %v756_v51, %v1563_v21  ;;  %v759_v59 = vmul.f32 %v1561_v20, %v754_v54 }
 0x312   :  { %1284 = vmatpush3.msra.mxu1 %v1495_v9 }
 0x313   :  { %1285 = vmatprep.subr.mxu1 %v1501_v10  ;;  %v763_v61 = vadd.f32 %v759_v59, %v1573_v33 }
 0x314   :  { %1286 = vmatpush3.msra.mxu1 %v1501_v10 }
 0x315   :  { %1287 = vmatprep.subr.mxu1 %v1512_v11 }
 0x316   :  { %1288 = vmatpush3.msra.mxu1 %v1512_v11 }
 0x317   :  { %v1378_v56 = vpop.eup %1377  ;;  %1289 = vmatprep.subr.mxu1 %v1520_v13 }
 0x318   :  { %v1380_v57 = vpop.eup %1379  ;;  %1266 = vmatprep.mubr.msk.f32.mxu1 %vm118_vm0, %v1378_v56  ;;  %1290 = vmatpush3.msra.mxu1 %v1520_v13 }
 0x319   :  { %1267 = vmatmul.mubr.msk.f32.gmra.mxu1 %vm118_vm0, %v1380_v57  ;;  %1311 = vmatprep.subr.mxu1 %v1001_v7 }
 0x3d1   :  { %v1265_v0 = vpop.f32.mrf.mxu1 }
 0x3d2   :  { %v604_v3 = vadd.f32 %v1265_v0, %v503_v63  ;;  %v762_v63 = vadd.f32 %v758_v60, %v1575_v34 }
 0x3d3   :  { %v584_v4 = vpop.f32.mrf.mxu1 }
 0x3d4   :  { %v603_v5 = vadd.f32 %v584_v4, %v502_v2 }
 0x3d6   :  { %1381 = vtanh.f32 %v603_v5 }
 0x3d7   :  { %1383 = vtanh.f32 %v604_v3 }
 0x3d9   :  { %v1268_v12 = vpop.f32.mrf.mxu1 }
 0x3da   :  { %v606_v15 = vadd.f32 %v1268_v12, %v505_v8  ;;  %v1000_v8 = vld [vmem:[%s1736_s4 + $0x10] sm:$0xff]  ;;  %v999_v12 = vld [vmem:[%s1736_s4 + $0x8] sm:$0xff] }
 0x3db   :  { %v594_v16 = vpop.f32.mrf.mxu1 }
 0x3dc   :  { %v605_v17 = vadd.f32 %v594_v16, %v504_v14  ;;  %v998_v14 = vld [vmem:[%s1736_s4] sm:$0xff] }
 0x3de   :  { %1385 = vtanh.f32 %v605_v17 }
 0x3df   :  { %1387 = vtanh.f32 %v606_v15  ;;  %v875_v15 = vpop.permute.xlu1 %874 }
 0x3e0   :  { %v886_v17 = vmul.f32 %v1561_v20, %v875_v15 }
 0x3e3   :  { %v1382_v18 = vpop.eup %1381 }
 0x3e4   :  { %v1384_v19 = vpop.eup %1383  ;;  %1277 = vmatprep.mubr.msk.f32.mxu0 %vm118_vm0, %v1382_v18 }
 0x3e5   :  { %1278 = vmatmul.mubr.msk.f32.vlgmr.msra.gmra.mxu0 %vm118_vm0, %v1384_v19  ;;  %v890_v19 = vadd.f32 %v886_v17, %v1567_v25 }
 0x3e6   :  { %1298 = vmatpush3.msra.mxu0 %v1495_v9  ;;  %v613_v9 = vpop.permute.xlu0 %612 }
 0x3e7   :  { %1299 = vmatprep.subr.mxu0 %v1501_v10 }
 0x3e8   :  { %1300 = vmatpush3.msra.mxu0 %v1501_v10  ;;  %v627_v10 = vmul.f32 %v1561_v20, %v613_v9  ;;  %v879_v9 = vpop.permute.xlu1 %878 }
 0x3e9   :  { %1301 = vmatprep.subr.mxu0 %v1512_v11 }
 0x3ea   :  { %1302 = vmatpush3.msra.mxu0 %v1512_v11  ;;  %v625_v11 = vpop.permute.xlu0 %624  ;;  %v631_v29 = vadd.f32 %v627_v10, %v1563_v21 }
 0x3eb   :  { %v1386_v22 = vpop.eup %1385  ;;  %1303 = vmatprep.subr.mxu0 %v1520_v13 }
 0x3ec   :  { %v1388_v23 = vpop.eup %1387  ;;  %1280 = vmatprep.mubr.msk.f32.mxu0 %vm118_vm0, %v1386_v22  ;;  %1304 = vmatpush3.msra.mxu0 %v1520_v13  ;;  %v630_v13 = vmul.f32 %v1561_v20, %v625_v11  ;;  %v887_v11 = vmul.f32 %v1561_v20, %v879_v9 }
 0x3ed   :  { %1281 = vmatmul.mubr.msk.f32.gmra.mxu0 %vm118_vm0, %v1388_v23 }
 0x3ee   :  { %v634_v37 = vadd.f32 %v630_v13, %v1573_v33  ;;  %v746_v48 = vpop.permute.xlu0 %745 }
 0x3ef   :  { %v757_v50 = vmul.f32 %v1561_v20, %v746_v48 }
 0x3f1   :  { %v761_v52 = vadd.f32 %v757_v50, %v1567_v25 }
 0x3f2   :  { %v871_v16 = vpop.permute.xlu0 %870 }
 0x3f3   :  { %v885_v18 = vmul.f32 %v1561_v20, %v871_v16 }
 0x3f5   :  { %v889_v24 = vadd.f32 %v885_v18, %v1563_v21 }
 0x3f6   :  { %v883_v23 = vpop.permute.xlu0 %882 }
 0x4a5   :  { %v1279_v28 = vpop.f32.mrf.mxu0 }
 0x4a6   :  { %v733_v31 = vadd.f32 %v1279_v28, %v632_v27  ;;  %v888_v28 = vmul.f32 %v1561_v20, %v883_v23 }
 0x4a7   :  { %v713_v32 = vpop.f32.mrf.mxu0 }
 0x4a8   :  { %v732_v35 = vadd.f32 %v713_v32, %v631_v29  ;;  %v892_v29 = vadd.f32 %v888_v28, %v1573_v33  ;;  %v1144_v33 = vld [vmem:[%s1737_s5] ss:$0 sm:$0xff] }
 0x4aa   :  { %1389 = vtanh.f32 %v732_v35 }
 0x4ab   :  { %1391 = vtanh.f32 %v733_v31  ;;  %v891_v31 = vadd.f32 %v887_v11, %v1575_v34 }
 0x4ad   :  { %v1282_v38 = vpop.f32.mrf.mxu0 }
 0x4ae   :  { %v735_v40 = vadd.f32 %v1282_v38, %v634_v37 }
 0x4af   :  { %v723_v41 = vpop.f32.mrf.mxu0 }
 0x4b0   :  { %v734_v42 = vadd.f32 %v723_v41, %v633_v39 }
 0x4b2   :  { %1393 = vtanh.f32 %v734_v42 }
 0x4b3   :  { %1395 = vtanh.f32 %v735_v40 }
 0x4b7   :  { %v1390_v43 = vpop.eup %1389 }
 0x4b8   :  { %v1392_v44 = vpop.eup %1391  ;;  %1291 = vmatprep.mubr.msk.f32.mxu1 %vm118_vm0, %v1390_v43 }
 0x4b9   :  { %1292 = vmatmul.mubr.msk.f32.vlgmr.msra.gmra.mxu1 %vm118_vm0, %v1392_v44 }
 0x4ba   :  { %1312 = vmatpush3.msra.mxu1 %v1001_v7 }
 0x4bb   :  { %1313 = vmatprep.subr.mxu1 %v1000_v8 }
 0x4bc   :  { %1314 = vmatpush3.msra.mxu1 %v1000_v8 }
 0x4bd   :  { %1315 = vmatprep.subr.mxu1 %v999_v12 }
 0x4be   :  { %1316 = vmatpush3.msra.mxu1 %v999_v12 }
 0x4bf   :  { %v1394_v45 = vpop.eup %1393  ;;  %1317 = vmatprep.subr.mxu1 %v998_v14 }
 0x4c0   :  { %v1396_v46 = vpop.eup %1395  ;;  %1294 = vmatprep.mubr.msk.f32.mxu1 %vm118_vm0, %v1394_v45  ;;  %1318 = vmatpush3.msra.mxu1 %v998_v14 }
 0x4c1   :  { %1295 = vmatmul.mubr.msk.f32.gmra.mxu1 %vm118_vm0, %v1396_v46 }
 0x579   :  { %v1293_v53 = vpop.f32.mrf.mxu1 }
 0x57a   :  { %v862_v56 = vadd.f32 %v1293_v53, %v761_v52 }
 0x57b   :  { %v842_v57 = vpop.f32.mrf.mxu1 }
 0x57c   :  { %v861_v58 = vadd.f32 %v842_v57, %v760_v55 }
 0x57e   :  { %1397 = vtanh.f32 %v861_v58 }
 0x57f   :  { %1399 = vtanh.f32 %v862_v56 }
 0x581   :  { %v1296_v62 = vpop.f32.mrf.mxu1 }
 0x582   :  { %v864_v0 = vadd.f32 %v1296_v62, %v763_v61 }
 0x583   :  { %v852_v1 = vpop.f32.mrf.mxu1 }
 0x584   :  { %v863_v2 = vadd.f32 %v852_v1, %v762_v63 }
 0x586   :  { %1401 = vtanh.f32 %v863_v2 }
 0x587   :  { %1403 = vtanh.f32 %v864_v0 }
 0x58b   :  { %v1398_v3 = vpop.eup %1397 }
 0x58c   :  { %v1400_v4 = vpop.eup %1399  ;;  %1305 = vmatprep.mubr.msk.f32.mxu0 %vm118_vm0, %v1398_v3 }
 0x58d   :  { %1306 = vmatmul.mubr.msk.f32.vlgmr.msra.gmra.mxu0 %vm118_vm0, %v1400_v4 }
 0x593   :  { %v1402_v5 = vpop.eup %1401 }
 0x594   :  { %v1404_v6 = vpop.eup %1403  ;;  %1308 = vmatprep.mubr.msk.f32.mxu0 %vm118_vm0, %v1402_v5 }
 0x595   :  { %1309 = vmatmul.mubr.msk.f32.gmra.mxu0 %vm118_vm0, %v1404_v6 }
 0x64d   :  { %v1307_v22 = vpop.f32.mrf.mxu0 }
 0x64e   :  { %v991_v26 = vadd.f32 %v1307_v22, %v890_v19 }
 0x64f   :  { %v971_v10 = vpop.f32.mrf.mxu0 }
 0x650   :  { %v990_v27 = vadd.f32 %v971_v10, %v889_v24 }
 0x652   :  { %1405 = vtanh.f32 %v990_v27 }
 0x653   :  { %1407 = vtanh.f32 %v991_v26 }
 0x655   :  { %v1310_v30 = vpop.f32.mrf.mxu0 }
 0x656   :  { %v993_v25 = vadd.f32 %v1310_v30, %v892_v29 }
 0x657   :  { %v981_v32 = vpop.f32.mrf.mxu0 }
 0x658   :  { %v992_v35 = vadd.f32 %v981_v32, %v891_v31 }
 0x65a   :  { %1409 = vtanh.f32 %v992_v35 }
 0x65b   :  { %1411 = vtanh.f32 %v993_v25 }
 0x65f   :  { %v1406_v21 = vpop.eup %1405 }
 0x660   :  { %v1408_v13 = vpop.eup %1407  ;;  %1319 = vmatprep.mubr.msk.f32.mxu1 %vm118_vm0, %v1406_v21 }
 0x661   :  { %1320 = vmatmul.mubr.msk.f32.vlgmr.msra.gmra.mxu1 %vm118_vm0, %v1408_v13 }
 0x667   :  { %v1410_v36 = vpop.eup %1409 }
 0x668   :  { %v1412_v20 = vpop.eup %1411  ;;  %1322 = vmatprep.mubr.msk.f32.mxu1 %vm118_vm0, %v1410_v36 }
 0x669   :  { %1323 = vmatmul.mubr.msk.f32.gmra.mxu1 %vm118_vm0, %v1412_v20 }
 0x721   :  { %v1321_v34 = vpop.f32.mrf.mxu1 }
 0x722   :  { %v1093_v37 = vadd.f32 %v1321_v34, %v1144_v33 }
 0x723   :  { %v1087_v38 = vpop.f32.mrf.mxu1 }
 0x724   :  { %1108 = vst.msk [vmem:[%s1738_s6 + $0x8] sm:$0xff] %vm1106_vm1, %v1093_v37  ;;  %v1088_v39 = vadd.f32 %v1144_v33, %v1087_v38 }
 0x726   :  { %1107 = vst.msk [vmem:[%s1738_s6] sm:$0xff] %vm1106_vm1, %v1088_v39 }
 0x729   :  { %v1324_v40 = vpop.f32.mrf.mxu1 }
 0x72a   :  { %v1103_v41 = vadd.f32 %v1324_v40, %v1144_v33 }
 0x72b   :  { %v1097_v42 = vpop.f32.mrf.mxu1 }
 0x72c   :  { %1110 = vst.msk [vmem:[%s1738_s6 + $0x18] sm:$0xff] %vm1106_vm1, %v1103_v41  ;;  %v1098_v43 = vadd.f32 %v1144_v33, %v1097_v42 }
 0x72e   :  { %1109 = vst.msk [vmem:[%s1738_s6 + $0x10] sm:$0xff] %vm1106_vm1, %v1098_v43 }

</bundles_post_ra>
